<compile_context>
chip_gen: v5e
topology: v5e:2x2
jax: 0.10.0
libtpu: 0.0.40
codegen_flags: <defaults>
</compile_context>

<pallas_src>
import functools

import jax
import jax.numpy as jnp
from jax.experimental import pallas as pl
from jax.experimental.pallas import tpu as pltpu


def _gating_kernel(coord_ref, dist_ref, w1c_ref, w1d_ref, b1_ref, w2_ref,
                   b2_ref, out_ref):
    c = coord_ref[...]                                     # (T, E), native dtype
    d = dist_ref[...]                                      # (T, E)

    # First Linear (2E -> 2E): concat folded into two matmuls, f32 accumulate.
    # Activations and W1 halves share a dtype (bf16 stays a bf16 MXU pass).
    h = (jnp.dot(c, w1c_ref[...], preferred_element_type=jnp.float32)
         + jnp.dot(d, w1d_ref[...], preferred_element_type=jnp.float32)
         + b1_ref[...])                                    # (T, 2E) f32
    h = jnp.maximum(h, 0.0)                                # ReLU

    # Second Linear (2E -> 1): tiny K-reduction -> VPU multiply + lane reduce
    # (avoids a 1-output-lane MXU matmul).  b2 is an SMEM scalar.
    logit = jnp.sum(h * w2_ref[...], axis=-1, keepdims=True) + b2_ref[0]  # (T,1)
    g = jax.nn.sigmoid(logit)                              # f32 gate (EUP)

    # Blend in the native dtype:  g*c + (1-g)*d  ==  d + g*(c - d).
    g_n = g.astype(c.dtype)
    out_ref[...] = (d + g_n * (c - d)).astype(out_ref.dtype)


def _round_up(x, m):
    return (x + m - 1) // m * m


def _vmem_capacity_bytes():
    """Generation-aware VMEM capacity (64 MiB v7x, 128 MiB v5e/v6e)."""
    try:
        return int(pltpu.get_tpu_info().vmem_capacity_bytes)
    except Exception:
        return 64 * 1024 * 1024          # conservative default (v7x per-core)


def _pick_row_tile(rows, embed_dim, act_itemsize, w_itemsize, budget_bytes,
                   requested):
    """Largest row tile (multiple of 16 sublanes, ok for f32 and bf16) whose
    double-buffered working set — including in-kernel f32 intermediates —
    stays within `budget_bytes`."""
    E = embed_dim

    def vmem_bytes(t):
        stream = 3 * 2 * t * E * act_itemsize        # coord/dist/out, dbl-buffered
        weights = 2 * 2 * E * (2 * E) * w_itemsize   # two W1 halves, dbl-buffered
        vecs = 2 * 2 * (2 * E) * 4                   # b1 + w2 row, dbl-buffered
        inter = t * 12 * E * 4                       # h, h*w2 product, f32 temps
        return stream + weights + vecs + inter

    rows_padded = _round_up(rows, 16)
    hard_cap = min(8192, rows_padded)
    if requested is not None:
        hard_cap = min(hard_cap, _round_up(max(int(requested), 16), 16))

    tile = 16
    t = 16
    while t <= hard_cap:
        if vmem_bytes(t) <= budget_bytes:
            tile = t
        t += 16
    return tile


@functools.partial(jax.jit, static_argnames=("row_tile",))
def contextual_gating(coord_feat, dist_feat, w1, b1, w2, b2, *, row_tile=None):
    """coord_feat, dist_feat: [B, N, E].  w1: (2E, 2E) stored as (in, out);
    b1: (2E,); w2: (2E, 1); b2: (1,).  Returns [B, N, E].
    row_tile=None -> auto-size the row tile from the VMEM budget."""
    B, N, E = coord_feat.shape
    dtype = coord_feat.dtype
    rows = B * N

    c2 = coord_feat.reshape(rows, E)          # contiguous view, no HBM copy
    d2 = dist_feat.reshape(rows, E)

    # Match W1's dtype to the activations so bf16 inputs get a single-pass
    # bf16 MXU matmul (halves weight DMA + weight VMEM); f32 stays f32.
    w_dtype = dtype if dtype in (jnp.bfloat16, jnp.float16) else jnp.float32
    w1_p = w1.astype(w_dtype)

    b1_2d = b1.reshape(1, 2 * E).astype(jnp.float32)     # added post-accumulate
    w2_row = w2.reshape(1, 2 * E).astype(jnp.float32)    # lane-dense VPU reduce
    b2_1d = b2.reshape(1).astype(jnp.float32)            # SMEM scalar

    vmem_cap = _vmem_capacity_bytes()
    budget = int(0.40 * vmem_cap)             # working-set budget (~25 MiB v7x)
    vmem_limit = max(32 * 1024 * 1024,
                     min(int(0.75 * vmem_cap), 96 * 1024 * 1024))

    tile = _pick_row_tile(rows, E, jnp.dtype(dtype).itemsize,
                          jnp.dtype(w_dtype).itemsize, budget, row_tile)
    grid = (pl.cdiv(rows, tile),)             # partial last block is clipped

    row_spec = pl.BlockSpec((tile, E), lambda i: (i, 0))
    vec_spec = pl.BlockSpec((1, 2 * E), lambda i: (0, 0))

    if E % 16 == 0:
        # Read the two halves of W1 in place via block indices (0,0) / (1,0)
        # along the (in) axis — no host-side slice copies.
        w1_args = (w1_p, w1_p)
        w1_specs = [pl.BlockSpec((E, 2 * E), lambda i: (0, 0)),
                    pl.BlockSpec((E, 2 * E), lambda i: (1, 0))]
    else:
        # Fallback for odd E: slice on host (block == full array dims).
        w1_args = (w1_p[:E, :], w1_p[E:, :])
        w1_specs = [pl.BlockSpec((E, 2 * E), lambda i: (0, 0)),
                    pl.BlockSpec((E, 2 * E), lambda i: (0, 0))]

    out = pl.pallas_call(
        _gating_kernel,
        out_shape=jax.ShapeDtypeStruct((rows, E), dtype),
        grid_spec=pltpu.PrefetchScalarGridSpec(
            num_scalar_prefetch=0,
            grid=grid,
            in_specs=[
                row_spec,                                     # coord rows
                row_spec,                                     # dist rows
                *w1_specs,                                    # W1 coord / dist halves
                vec_spec,                                     # b1 (f32)
                vec_spec,                                     # w2 row (f32)
                pl.BlockSpec(memory_space=pltpu.MemorySpace.SMEM),  # b2 scalar
            ],
            out_specs=pl.BlockSpec((tile, E), lambda i: (i, 0)),
        ),
        compiler_params=pltpu.CompilerParams(
            dimension_semantics=("parallel",),    # megacore shards row tiles
            vmem_limit_bytes=vmem_limit),
    )(c2, d2, *w1_args, b1_2d, w2_row, b2_1d)

    return out.reshape(B, N, E)


def _reference(coord_feat, dist_feat, w1, b1, w2, b2):
    hp = jax.lax.Precision.HIGHEST
    combined = jnp.concatenate([coord_feat, dist_feat], axis=-1)
    h = jnp.maximum(jnp.dot(combined, w1, precision=hp) + b1, 0.0)
    g = jax.nn.sigmoid(jnp.dot(h, w2, precision=hp) + b2)
    return g * coord_feat + (1.0 - g) * dist_feat


if __name__ == "__main__":
    # Small, deterministic example (E=128 -> lane-dense blocks).
    B, N, E = 2, 16, 128
    key = jax.random.PRNGKey(0)
    k1, k2, k3, k4, k5, k6 = jax.random.split(key, 6)

    coord_feat = jax.random.normal(k1, (B, N, E), dtype=jnp.float32)
    dist_feat = jax.random.normal(k2, (B, N, E), dtype=jnp.float32)

    # Parameters for Linear(2E, 2E) and Linear(2E, 1), stored as (in, out)
    # so that y = x @ W + b (equivalent to torch's x @ weight.T + bias).
    fan_in = 2 * E
    bound = float(1.0 / jnp.sqrt(jnp.float32(fan_in)))
    w1 = jax.random.uniform(k3, (2 * E, 2 * E), jnp.float32, -bound, bound)
    b1 = jax.random.uniform(k4, (2 * E,), jnp.float32, -bound, bound)
    w2 = jax.random.uniform(k5, (2 * E, 1), jnp.float32, -bound, bound)
    b2 = jax.random.uniform(k6, (1,), jnp.float32, -bound, bound)

    # Tolerance allows for MXU multi-pass f32 matmul vs XLA HIGHEST reference;
    # structural bugs would show up as O(0.1 - 1) errors.
    out = jax.block_until_ready(
        contextual_gating(coord_feat, dist_feat, w1, b1, w2, b2))
    ref = _reference(coord_feat, dist_feat, w1, b1, w2, b2)
    assert out.shape == (B, N, E)
    assert jnp.max(jnp.abs(out - ref)) < 5e-3, "mismatch vs reference"

    # Ragged row count (B*N=21, not a multiple of the sublane tile) ->
    # exercises the clipped partial last block (no pad copy).
    B2, N2 = 3, 7
    c_r = jax.random.normal(k1, (B2, N2, E), dtype=jnp.float32)
    d_r = jax.random.normal(k2, (B2, N2, E), dtype=jnp.float32)
    out_r = jax.block_until_ready(contextual_gating(c_r, d_r, w1, b1, w2, b2))
    ref_r = _reference(c_r, d_r, w1, b1, w2, b2)
    assert out_r.shape == (B2, N2, E)
    assert jnp.max(jnp.abs(out_r - ref_r)) < 5e-3, "mismatch vs reference (ragged)"

    # bf16 activations -> bf16 W1 on the MXU (f32 accumulation), bf16 blend.
    c_h = coord_feat.astype(jnp.bfloat16)
    d_h = dist_feat.astype(jnp.bfloat16)
    out_h = jax.block_until_ready(contextual_gating(c_h, d_h, w1, b1, w2, b2))
    ref_h = _reference(c_h.astype(jnp.float32), d_h.astype(jnp.float32),
                       w1, b1, w2, b2)
    assert out_h.shape == (B, N, E) and out_h.dtype == jnp.bfloat16
    assert jnp.max(jnp.abs(out_h.astype(jnp.float32) - ref_h)) < 1e-1, \
        "mismatch vs reference (bf16)"

    print("KERNEL_OK")
</pallas_src>

<mosaic_0001>
module attributes {stable_mosaic.version = 11 : i64} {
  func.func @_gating_kernel(%arg0: i32, %arg1: memref<32x128xf32, #tpu.memory_space<vmem>>, %arg2: memref<32x128xf32, #tpu.memory_space<vmem>>, %arg3: memref<128x256xf32, #tpu.memory_space<vmem>>, %arg4: memref<128x256xf32, #tpu.memory_space<vmem>>, %arg5: memref<1x256xf32, #tpu.memory_space<vmem>>, %arg6: memref<1x256xf32, #tpu.memory_space<vmem>>, %arg7: memref<1xf32, #tpu.memory_space<smem>>, %arg8: memref<32x128xf32, #tpu.memory_space<vmem>>) attributes {dimension_semantics = [#tpu.dimension_semantics<parallel>], iteration_bounds = array<i64: 1>, scalar_prefetch = 0 : i64, scratch_operands = 0 : i64, tpu.core_type = #tpu.core_type<tc>, window_params = [{transform_indices = @transform_0, window_bounds = array<i64: 32, 128>}, {transform_indices = @transform_1, window_bounds = array<i64: 32, 128>}, {transform_indices = @transform_2, window_bounds = array<i64: 128, 256>}, {transform_indices = @transform_3, window_bounds = array<i64: 128, 256>}, {pipeline_mode = #tpu.pipeline_mode<synchronous>, transform_indices = @transform_4, window_bounds = array<i64: 1, 256>}, {pipeline_mode = #tpu.pipeline_mode<synchronous>, transform_indices = @transform_5, window_bounds = array<i64: 1, 256>}, {transform_indices = @transform_6, window_bounds = array<i64: 1>}, {transform_indices = @transform_7, window_bounds = array<i64: 32, 128>}]} {
    %c0 = arith.constant 0 : index
    %c0_0 = arith.constant 0 : index
    %0 = vector.load %arg1[%c0, %c0_0] : memref<32x128xf32, #tpu.memory_space<vmem>>, vector<32x128xf32>
    %c0_1 = arith.constant 0 : index
    %c0_2 = arith.constant 0 : index
    %1 = vector.load %arg2[%c0_1, %c0_2] : memref<32x128xf32, #tpu.memory_space<vmem>>, vector<32x128xf32>
    %c0_3 = arith.constant 0 : index
    %c0_4 = arith.constant 0 : index
    %2 = vector.load %arg3[%c0_3, %c0_4] : memref<128x256xf32, #tpu.memory_space<vmem>>, vector<128x256xf32>
    %cst = arith.constant dense<0.000000e+00> : vector<32x256xf32>
    %3 = tpu.matmul %0, %2, %cst {dimension_numbers = #tpu.dot_dimension_numbers<[1], [0], [0], [1], [0, 0, 1, 1], [], []>} : vector<32x128xf32>, vector<128x256xf32>, vector<32x256xf32> -> vector<32x256xf32>
    %c0_5 = arith.constant 0 : index
    %c0_6 = arith.constant 0 : index
    %4 = vector.load %arg4[%c0_5, %c0_6] : memref<128x256xf32, #tpu.memory_space<vmem>>, vector<128x256xf32>
    %cst_7 = arith.constant dense<0.000000e+00> : vector<32x256xf32>
    %5 = tpu.matmul %1, %4, %cst_7 {dimension_numbers = #tpu.dot_dimension_numbers<[1], [0], [0], [1], [0, 0, 1, 1], [], []>} : vector<32x128xf32>, vector<128x256xf32>, vector<32x256xf32> -> vector<32x256xf32>
    %6 = arith.addf %3, %5 : vector<32x256xf32>
    %c0_8 = arith.constant 0 : index
    %c0_9 = arith.constant 0 : index
    %7 = vector.load %arg5[%c0_8, %c0_9] : memref<1x256xf32, #tpu.memory_space<vmem>>, vector<1x256xf32>
    %8 = vector.broadcast %7 : vector<1x256xf32> to vector<32x256xf32>
    %9 = arith.addf %6, %8 : vector<32x256xf32>
    %cst_10 = arith.constant 0.000000e+00 : f32
    %10 = vector.broadcast %cst_10 : f32 to vector<32x256xf32>
    %11 = arith.maximumf %9, %10 : vector<32x256xf32>
    %c0_11 = arith.constant 0 : index
    %c0_12 = arith.constant 0 : index
    %12 = vector.load %arg6[%c0_11, %c0_12] : memref<1x256xf32, #tpu.memory_space<vmem>>, vector<1x256xf32>
    %13 = vector.broadcast %12 : vector<1x256xf32> to vector<32x256xf32>
    %14 = arith.mulf %11, %13 : vector<32x256xf32>
    %cst_13 = arith.constant dense<0.000000e+00> : vector<32xf32>
    %15 = vector.multi_reduction <add>, %14, %cst_13 [1] : vector<32x256xf32> to vector<32xf32>
    %16 = vector.shape_cast %15 : vector<32xf32> to vector<32x1xf32>
    %c0_14 = arith.constant 0 : index
    %17 = memref.load %arg7[%c0_14] : memref<1xf32, #tpu.memory_space<smem>>
    %18 = vector.broadcast %17 : f32 to vector<32x1xf32>
    %19 = arith.addf %16, %18 : vector<32x1xf32>
    %20 = arith.negf %19 : vector<32x1xf32>
    %21 = math.exp %20 : vector<32x1xf32>
    %cst_15 = arith.constant 1.000000e+00 : f32
    %22 = vector.broadcast %cst_15 : f32 to vector<32x1xf32>
    %23 = arith.addf %22, %21 : vector<32x1xf32>
    %24 = arith.divf %22, %23 : vector<32x1xf32>
    %25 = arith.subf %0, %1 : vector<32x128xf32>
    %26 = vector.broadcast %24 : vector<32x1xf32> to vector<32x128xf32>
    %27 = arith.mulf %26, %25 : vector<32x128xf32>
    %28 = arith.addf %1, %27 : vector<32x128xf32>
    %c0_16 = arith.constant 0 : index
    %c0_17 = arith.constant 0 : index
    %29 = vector.load %arg8[%c0_16, %c0_17] : memref<32x128xf32, #tpu.memory_space<vmem>>, vector<32x128xf32>
    tpu.vector_store %arg8[%c0_16, %c0_17], %28 {strides = array<i32>} : memref<32x128xf32, #tpu.memory_space<vmem>>, vector<32x128xf32>,
    return
  }
  func.func @transform_0(%arg0: i32) -> (i32, i32) {
    %c0_i32 = arith.constant 0 : i32
    %c0_i32_0 = arith.constant 0 : i32
    return %arg0, %c0_i32 : i32, i32
  }
  func.func @transform_1(%arg0: i32) -> (i32, i32) {
    %c0_i32 = arith.constant 0 : i32
    %c0_i32_0 = arith.constant 0 : i32
    return %arg0, %c0_i32 : i32, i32
  }
  func.func @transform_2(%arg0: i32) -> (i32, i32) {
    %c0_i32 = arith.constant 0 : i32
    %c0_i32_0 = arith.constant 0 : i32
    %c0_i32_1 = arith.constant 0 : i32
    return %c0_i32, %c0_i32_0 : i32, i32
  }
  func.func @transform_3(%arg0: i32) -> (i32, i32) {
    %c1_i32 = arith.constant 1 : i32
    %c0_i32 = arith.constant 0 : i32
    %c0_i32_0 = arith.constant 0 : i32
    return %c1_i32, %c0_i32 : i32, i32
  }
  func.func @transform_4(%arg0: i32) -> (i32, i32) {
    %c0_i32 = arith.constant 0 : i32
    %c0_i32_0 = arith.constant 0 : i32
    %c0_i32_1 = arith.constant 0 : i32
    return %c0_i32, %c0_i32_0 : i32, i32
  }
  func.func @transform_5(%arg0: i32) -> (i32, i32) {
    %c0_i32 = arith.constant 0 : i32
    %c0_i32_0 = arith.constant 0 : i32
    %c0_i32_1 = arith.constant 0 : i32
    return %c0_i32, %c0_i32_0 : i32, i32
  }
  func.func @transform_6(%arg0: i32) -> i32 {
    %c0_i32 = arith.constant 0 : i32
    %c0_i32_0 = arith.constant 0 : i32
    return %c0_i32 : i32
  }
  func.func @transform_7(%arg0: i32) -> (i32, i32) {
    %c0_i32 = arith.constant 0 : i32
    %c0_i32_0 = arith.constant 0 : i32
    return %arg0, %c0_i32 : i32, i32
  }
}

</mosaic_0001>

<bundles_post_ra>
// kernel: contextual_gating.1
= control target key start
LH: loop header
LB: loop body
LE: loop exit
PB: predicated region body
PF: predicated region fallthrough
CT: control target
= control target key end

     0   :  { %13 = vsyncpa [#allocation4], 0  ;;  %s730_s0 = inlined_call_operand.hbm [shape: f32[32,128], index: 0, kind: input, shape index: {}]   ;;  %s731_s1 = inlined_call_operand.hbm [shape: f32[32,128], index: 1, kind: input, shape index: {}]   ;;  %s732_s2 = inlined_call_operand.hbm [shape: f32[256,256], index: 2, kind: input, shape index: {}, may-alias: {2,3}]   ;;  %s733_s3 = inlined_call_operand.hbm [shape: f32[256,256], index: 3, kind: input, shape index: {}, may-alias: {2,3}]   ;;  %s734_s4 = inlined_call_operand.vmem [shape: f32[1,256], index: 4, kind: input, shape index: {}]   ;;  %s735_s5 = inlined_call_operand.vmem [shape: f32[1,256], index: 5, kind: input, shape index: {}]   ;;  %s736_s6 = inlined_call_operand.<no memory space> [shape: f32[1], index: 6, kind: input, shape index: {}]   ;;  %s737_s7 = inlined_call_operand.hbm [shape: f32[32,128], index: 7, kind: output, shape index: {}]  }
   0x1   :  { %14 = vsyncpa [#allocation7], 0 }
   0x2   :  { %15 = vsyncpa [#allocation10], 0 }
   0x3   :  { %16 = vsyncpa [#allocation5], 0  ;;  %s34_s26 = sshll.u32 %s731_s1, 4  ;;  %s604_s27 = smov [#allocation6]   ;;  %s35_s26 = int_to_ptr.hbm [resolvable:$true] %s34_s26 }
   0x4   :  { %s36_s28 = sshll.u32 %s604_s27, 4  ;;  %s21_s8 = sshll.u32 %s730_s0, 4  ;;  %s37_s28 = int_to_ptr.vmem [resolvable:$true] %s36_s28  ;;  %s22_s8 = int_to_ptr.hbm [resolvable:$true] %s21_s8 }
   0x5   :  { %s605_s9 = smov 128   ;;  %s606_s10 = smov 8  }
   0x6   :  { %42 = dma.hbm_to_vmem [thread:$0]  %s35_s26, 512, %s37_s28, [#allocation7], %s605_s9, %s605_s9, %s606_s10  }
   0x7   :  { %s607_s11 = smov [#allocation3]   ;;  %s47_s1 = sshll.u32 %s732_s2, 4  ;;  %s48_s1 = int_to_ptr.hbm [resolvable:$true] %s47_s1 }
   0x8   :  { %s23_s12 = sshll.u32 %s607_s11, 4  ;;  %s608_s0 = smov [#allocation8]   ;;  %s24_s12 = int_to_ptr.vmem [resolvable:$true] %s23_s12 }
   0x9   :  { %29 = dma.hbm_to_vmem [thread:$0]  %s22_s8, 512, %s24_s12, [#allocation4], %s605_s9, %s605_s9, %s606_s10  }
   0xa   :  { %s49_s15 = sshll.u32 %s608_s0, 4  ;;  %s60_s18 = scalar_lea.hbm %s733_s3, 256  ;;  %s50_s15 = int_to_ptr.vmem [resolvable:$true] %s49_s15 }
   0xb   :  { %s609_s19 = smov 256   ;;  %s610_s20 = smov 16  }
   0xc   :  { %55 = dma.hbm_to_vmem [thread:$0]  %s48_s1, 4096, %s50_s15, [#allocation7], %s609_s19, %s609_s19, %s610_s20  }
   0xd   :  { %s61_s21 = sshll.u32 %s60_s18, 4  ;;  %s611_s22 = smov [#allocation9]   ;;  %s62_s21 = int_to_ptr.hbm [resolvable:$true] %s61_s21 }
   0xe   :  { %s63_s2 = sshll.u32 %s611_s22, 4  ;;  %s64_s2 = int_to_ptr.vmem [resolvable:$true] %s63_s2 }
   0xf   :  { %69 = dma.hbm_to_vmem [thread:$0]  %s62_s21, 4096, %s64_s2, [#allocation10], %s609_s19, %s609_s19, %s610_s20  }
  0x10   :  { %596 = dma.done.wait [#allocation4], 512  }
  0x11   :  { %597 = vsyncadd [#allocation4], 4294966784 }
  0x12   :  { %598 = dma.done.wait [#allocation7], 4608  }
  0x13   :  { %599 = vsyncadd [#allocation7], 4294962688 }
  0x14   :  { %600 = dma.done.wait [#allocation10], 4096  }
  0x15   :  { %601 = vsyncadd [#allocation10], 4294963200  ;;  %v130_v0 = vld [vmem:[#allocation8 + $0xf0] sm:$0xff]  ;;  %v131_v1 = vld [vmem:[#allocation8 + $0xf8] sm:$0xff]  ;;  %s432_s29 = sshll.u32 %s737_s7, 4  ;;  %s433_s29 = int_to_ptr.hbm [resolvable:$true] %s432_s29 }
  0x16   :  { %v128_v2 = vld [vmem:[#allocation8 + $0xe0] sm:$0xff]  ;;  %222 = vmatpush.msra.mxu2 %v130_v0  ;;  %251 = vmatpush.msra.mxu3 %v131_v1  ;;  %v129_v3 = vld [vmem:[#allocation8 + $0xe8] sm:$0xff]  ;;  %v126_v4 = vld [vmem:[#allocation8 + $0xd0] sm:$0xff] }
  0x17   :  { %v127_v5 = vld [vmem:[#allocation8 + $0xd8] sm:$0xff]  ;;  %v162_v6 = vld [vmem:[#allocation9 + $0xf0] sm:$0xff]  ;;  %v160_v8 = vld [vmem:[#allocation9 + $0xe0] sm:$0xff] }
  0x18   :  { %v163_v7 = vld [vmem:[#allocation9 + $0xf8] sm:$0xff]  ;;  %223 = vmatpush.msra.mxu2 %v128_v2  ;;  %252 = vmatpush.msra.mxu3 %v129_v3  ;;  %v161_v9 = vld [vmem:[#allocation9 + $0xe8] sm:$0xff]  ;;  %v124_v10 = vld [vmem:[#allocation8 + $0xc0] sm:$0xff] }
  0x19   :  { %164 = vmatpush.msra.mxu0 %v162_v6  ;;  %193 = vmatpush.msra.mxu1 %v163_v7  ;;  %v125_v11 = vld [vmem:[#allocation8 + $0xc8] sm:$0xff]  ;;  %v158_v12 = vld [vmem:[#allocation9 + $0xd0] sm:$0xff]  ;;  %v159_v13 = vld [vmem:[#allocation9 + $0xd8] sm:$0xff] }
  0x1a   :  { %224 = vmatpush.msra.mxu2 %v126_v4  ;;  %253 = vmatpush.msra.mxu3 %v127_v5  ;;  %v122_v14 = vld [vmem:[#allocation8 + $0xb0] sm:$0xff]  ;;  %v123_v15 = vld [vmem:[#allocation8 + $0xb8] sm:$0xff]  ;;  %v156_v16 = vld [vmem:[#allocation9 + $0xc0] sm:$0xff] }
  0x1b   :  { %165 = vmatpush.msra.mxu0 %v160_v8  ;;  %194 = vmatpush.msra.mxu1 %v161_v9  ;;  %v157_v17 = vld [vmem:[#allocation9 + $0xc8] sm:$0xff]  ;;  %v120_v18 = vld [vmem:[#allocation8 + $0xa0] sm:$0xff]  ;;  %v154_v20 = vld [vmem:[#allocation9 + $0xb0] sm:$0xff] }
  0x1c   :  { %225 = vmatpush.msra.mxu2 %v124_v10  ;;  %254 = vmatpush.msra.mxu3 %v125_v11  ;;  %v121_v19 = vld [vmem:[#allocation8 + $0xa8] sm:$0xff]  ;;  %v155_v21 = vld [vmem:[#allocation9 + $0xb8] sm:$0xff]  ;;  %v118_v22 = vld [vmem:[#allocation8 + $0x90] sm:$0xff] }
  0x1d   :  { %166 = vmatpush.msra.mxu0 %v158_v12  ;;  %195 = vmatpush.msra.mxu1 %v159_v13  ;;  %v119_v23 = vld [vmem:[#allocation8 + $0x98] sm:$0xff]  ;;  %v152_v24 = vld [vmem:[#allocation9 + $0xa0] sm:$0xff]  ;;  %v153_v25 = vld [vmem:[#allocation9 + $0xa8] sm:$0xff] }
  0x1e   :  { %226 = vmatpush.msra.mxu2 %v122_v14  ;;  %255 = vmatpush.msra.mxu3 %v123_v15  ;;  %v116_v26 = vld [vmem:[#allocation8 + $0x80] sm:$0xff]  ;;  %v117_v27 = vld [vmem:[#allocation8 + $0x88] sm:$0xff]  ;;  %v150_v28 = vld [vmem:[#allocation9 + $0x90] sm:$0xff] }
  0x1f   :  { %167 = vmatpush.msra.mxu0 %v156_v16  ;;  %196 = vmatpush.msra.mxu1 %v157_v17  ;;  %v151_v29 = vld [vmem:[#allocation9 + $0x98] sm:$0xff]  ;;  %v114_v30 = vld [vmem:[#allocation8 + $0x70] sm:$0xff]  ;;  %v148_v32 = vld [vmem:[#allocation9 + $0x80] sm:$0xff] }
  0x20   :  { %227 = vmatpush.msra.mxu2 %v120_v18  ;;  %256 = vmatpush.msra.mxu3 %v121_v19  ;;  %v115_v31 = vld [vmem:[#allocation8 + $0x78] sm:$0xff]  ;;  %v149_v33 = vld [vmem:[#allocation9 + $0x88] sm:$0xff]  ;;  %v112_v34 = vld [vmem:[#allocation8 + $0x60] sm:$0xff] }
  0x21   :  { %168 = vmatpush.msra.mxu0 %v154_v20  ;;  %197 = vmatpush.msra.mxu1 %v155_v21  ;;  %v113_v35 = vld [vmem:[#allocation8 + $0x68] sm:$0xff]  ;;  %v146_v36 = vld [vmem:[#allocation9 + $0x70] sm:$0xff]  ;;  %v147_v37 = vld [vmem:[#allocation9 + $0x78] sm:$0xff] }
  0x22   :  { %228 = vmatpush.msra.mxu2 %v118_v22  ;;  %257 = vmatpush.msra.mxu3 %v119_v23  ;;  %v110_v38 = vld [vmem:[#allocation8 + $0x50] sm:$0xff]  ;;  %v111_v39 = vld [vmem:[#allocation8 + $0x58] sm:$0xff]  ;;  %v144_v40 = vld [vmem:[#allocation9 + $0x60] sm:$0xff] }
  0x23   :  { %169 = vmatpush.msra.mxu0 %v152_v24  ;;  %198 = vmatpush.msra.mxu1 %v153_v25  ;;  %v145_v41 = vld [vmem:[#allocation9 + $0x68] sm:$0xff]  ;;  %v108_v42 = vld [vmem:[#allocation8 + $0x40] sm:$0xff]  ;;  %v142_v44 = vld [vmem:[#allocation9 + $0x50] sm:$0xff] }
  0x24   :  { %229 = vmatpush.msra.mxu2 %v116_v26  ;;  %258 = vmatpush.msra.mxu3 %v117_v27  ;;  %v109_v43 = vld [vmem:[#allocation8 + $0x48] sm:$0xff]  ;;  %v143_v45 = vld [vmem:[#allocation9 + $0x58] sm:$0xff]  ;;  %v106_v46 = vld [vmem:[#allocation8 + $0x30] sm:$0xff] }
  0x25   :  { %170 = vmatpush.msra.mxu0 %v150_v28  ;;  %199 = vmatpush.msra.mxu1 %v151_v29  ;;  %v107_v47 = vld [vmem:[#allocation8 + $0x38] sm:$0xff]  ;;  %v140_v48 = vld [vmem:[#allocation9 + $0x40] sm:$0xff]  ;;  %v141_v49 = vld [vmem:[#allocation9 + $0x48] sm:$0xff] }
  0x26   :  { %230 = vmatpush.msra.mxu2 %v114_v30  ;;  %259 = vmatpush.msra.mxu3 %v115_v31  ;;  %v104_v50 = vld [vmem:[#allocation8 + $0x20] sm:$0xff]  ;;  %v105_v51 = vld [vmem:[#allocation8 + $0x28] sm:$0xff]  ;;  %v138_v52 = vld [vmem:[#allocation9 + $0x30] sm:$0xff] }
  0x27   :  { %171 = vmatpush.msra.mxu0 %v148_v32  ;;  %200 = vmatpush.msra.mxu1 %v149_v33  ;;  %v139_v53 = vld [vmem:[#allocation9 + $0x38] sm:$0xff]  ;;  %v102_v54 = vld [vmem:[#allocation8 + $0x10] sm:$0xff]  ;;  %v136_v56 = vld [vmem:[#allocation9 + $0x20] sm:$0xff] }
  0x28   :  { %231 = vmatpush.msra.mxu2 %v112_v34  ;;  %260 = vmatpush.msra.mxu3 %v113_v35  ;;  %v103_v55 = vld [vmem:[#allocation8 + $0x18] sm:$0xff]  ;;  %v137_v57 = vld [vmem:[#allocation9 + $0x28] sm:$0xff]  ;;  %v100_v58 = vld [vmem:[#allocation8] sm:$0xff] }
  0x29   :  { %172 = vmatpush.msra.mxu0 %v146_v36  ;;  %201 = vmatpush.msra.mxu1 %v147_v37  ;;  %v101_v59 = vld [vmem:[#allocation8 + $0x8] sm:$0xff]  ;;  %v671_v60 = vld [vmem:[#allocation3] sm:$0xff]  ;;  %v134_v61 = vld [vmem:[#allocation9 + $0x10] sm:$0xff] }
  0x2a   :  { %232 = vmatpush.msra.mxu2 %v110_v38  ;;  %261 = vmatpush.msra.mxu3 %v111_v39  ;;  %v135_v62 = vld [vmem:[#allocation9 + $0x18] sm:$0xff]  ;;  %v132_v63 = vld [vmem:[#allocation9] sm:$0xff]  ;;  %v133_v0 = vld [vmem:[#allocation9 + $0x8] sm:$0xff] }
  0x2b   :  { %173 = vmatpush.msra.mxu0 %v144_v40  ;;  %202 = vmatpush.msra.mxu1 %v145_v41  ;;  %v675_v1 = vld [vmem:[#allocation6] sm:$0xff]  ;;  %v679_v2 = vld [vmem:[#allocation3 + $0x8] sm:$0xff]  ;;  %v687_v4 = vld [vmem:[#allocation3 + $0x10] sm:$0xff] }
  0x2c   :  { %233 = vmatpush.msra.mxu2 %v108_v42  ;;  %262 = vmatpush.msra.mxu3 %v109_v43  ;;  %v683_v3 = vld [vmem:[#allocation6 + $0x8] sm:$0xff]  ;;  %v691_v5 = vld [vmem:[#allocation6 + $0x10] sm:$0xff]  ;;  %v695_v6 = vld [vmem:[#allocation3 + $0x18] sm:$0xff] }
  0x2d   :  { %174 = vmatpush.msra.mxu0 %v142_v44  ;;  %203 = vmatpush.msra.mxu1 %v143_v45  ;;  %v699_v7 = vld [vmem:[#allocation6 + $0x18] sm:$0xff]  ;;  %v280_v8 = vld [vmem:[%s734_s4] sm:$0x3] }
  0x2e   :  { %234 = vmatpush.msra.mxu2 %v106_v46  ;;  %263 = vmatpush.msra.mxu3 %v107_v47  ;;  %v282_v11 = vperm.slane %v280_v8, 0  ;;  %v283_v12 = vperm.slane %v280_v8, 1  ;;  %v302_v15 = vld [vmem:[%s735_s5] sm:$0x3] }
  0x2f   :  { %175 = vmatpush.msra.mxu0 %v140_v48  ;;  %204 = vmatpush.msra.mxu1 %v141_v49  ;;  %v304_v20 = vperm.slane %v302_v15, 0  ;;  %v305_v21 = vperm.slane %v302_v15, 1 }
  0x30   :  { %235 = vmatpush.msra.mxu2 %v104_v50  ;;  %264 = vmatpush.msra.mxu3 %v105_v51 }
  0x31   :  { %176 = vmatpush.msra.mxu0 %v138_v52  ;;  %205 = vmatpush.msra.mxu1 %v139_v53 }
  0x32   :  { %236 = vmatpush.msra.mxu2 %v102_v54  ;;  %265 = vmatpush.msra.mxu3 %v103_v55 }
  0x33   :  { %177 = vmatpush.msra.mxu0 %v136_v56  ;;  %206 = vmatpush.msra.mxu1 %v137_v57 }
  0x34   :  { %237 = vmatpush.msra.mxu2 %v100_v58  ;;  %266 = vmatpush.msra.mxu3 %v101_v59 }
  0x35   :  { %238 = vmatmul.f32.vlgmr.msra.gmra.mxu2 %v671_v60  ;;  %267 = vmatmul.f32.vlgmr.msra.gmra.mxu3 %v671_v60 }
  0x36   :  { %178 = vmatpush.msra.mxu0 %v134_v61  ;;  %207 = vmatpush.msra.mxu1 %v135_v62 }
  0x38   :  { %179 = vmatpush.msra.mxu0 %v132_v63  ;;  %208 = vmatpush.msra.mxu1 %v133_v0 }
  0x39   :  { %180 = vmatmul.f32.vlgmr.msra.gmra.mxu0 %v675_v1  ;;  %209 = vmatmul.f32.vlgmr.msra.gmra.mxu1 %v675_v1 }
  0x3d   :  { %241 = vmatmul.f32.gmra.mxu2 %v679_v2  ;;  %270 = vmatmul.f32.gmra.mxu3 %v679_v2 }
  0x41   :  { %183 = vmatmul.f32.gmra.mxu0 %v683_v3  ;;  %212 = vmatmul.f32.gmra.mxu1 %v683_v3 }
  0x45   :  { %244 = vmatmul.f32.gmra.mxu2 %v687_v4  ;;  %273 = vmatmul.f32.gmra.mxu3 %v687_v4 }
  0x49   :  { %186 = vmatmul.f32.gmra.mxu0 %v691_v5  ;;  %215 = vmatmul.f32.gmra.mxu1 %v691_v5 }
  0x4d   :  { %247 = vmatmul.f32.gmra.mxu2 %v695_v6  ;;  %276 = vmatmul.f32.gmra.mxu3 %v695_v6 }
  0x51   :  { %189 = vmatmul.f32.gmra.mxu0 %v699_v7  ;;  %218 = vmatmul.f32.gmra.mxu1 %v699_v7 }
  0xb6   :  { %v181_v9 = vpop.f32.mrf.mxu0  ;;  %v210_v10 = vpop.f32.mrf.mxu1 }
  0xb8   :  { %v239_v13 = vpop.f32.mrf.mxu2  ;;  %v268_v14 = vpop.f32.mrf.mxu3 }
  0xb9   :  { %v240_v16 = vadd.f32 %v239_v13, %v181_v9  ;;  %v269_v17 = vadd.f32 %v268_v14, %v210_v10  ;;  %v329_v10 = vstv %s736_s6  ;;  %s612_s6 = smov [#allocation11]  }
  0xba   :  { %s430_s26 = sshll.u32 %s612_s6, 4  ;;  %s431_s26 = int_to_ptr.vmem [resolvable:$true] %s430_s26 }
  0xbb   :  { %v286_v18 = vadd.f32 %v282_v11, %v240_v16  ;;  %v287_v19 = vadd.f32 %v283_v12, %v269_v17 }
  0xbd   :  { %v294_v22 = vmax.f32 %v286_v18, 0.0  ;;  %v295_v23 = vmax.f32 %v287_v19, 0.0 }
  0xbe   :  { %v184_v24 = vpop.f32.mrf.mxu0  ;;  %v213_v25 = vpop.f32.mrf.mxu1 }
  0xbf   :  { %v308_v26 = vmul.f32 %v304_v20, %v294_v22  ;;  %v309_v27 = vmul.f32 %v305_v21, %v295_v23 }
  0xc0   :  { %v242_v28 = vpop.f32.mrf.mxu2  ;;  %v271_v29 = vpop.f32.mrf.mxu3 }
  0xc1   :  { %v243_v30 = vadd.f32 %v242_v28, %v184_v24  ;;  %v272_v31 = vadd.f32 %v271_v29, %v213_v25  ;;  %v316_v32 = vadd.f32 %v309_v27, %v308_v26 }
  0xc3   :  { %v288_v33 = vadd.f32 %v282_v11, %v243_v30  ;;  %v289_v34 = vadd.f32 %v283_v12, %v272_v31  ;;  %317 = vadd.xlane.f32.xlu0 %v316_v32 }
  0xc5   :  { %v296_v35 = vmax.f32 %v288_v33, 0.0  ;;  %v297_v36 = vmax.f32 %v289_v34, 0.0 }
  0xc6   :  { %v187_v37 = vpop.f32.mrf.mxu0  ;;  %v216_v38 = vpop.f32.mrf.mxu1 }
  0xc7   :  { %v310_v39 = vmul.f32 %v304_v20, %v296_v35  ;;  %v311_v40 = vmul.f32 %v305_v21, %v297_v36  ;;  %v410_v36 = vsub.f32 %v671_v60, %v675_v1 }
  0xc8   :  { %v245_v41 = vpop.f32.mrf.mxu2  ;;  %v274_v42 = vpop.f32.mrf.mxu3 }
  0xc9   :  { %v246_v43 = vadd.f32 %v245_v41, %v187_v37  ;;  %v275_v44 = vadd.f32 %v274_v42, %v216_v38  ;;  %v319_v45 = vadd.f32 %v311_v40, %v310_v39 }
  0xcb   :  { %v290_v46 = vadd.f32 %v282_v11, %v246_v43  ;;  %v291_v47 = vadd.f32 %v283_v12, %v275_v44  ;;  %320 = vadd.xlane.f32.xlu0 %v319_v45 }
  0xcd   :  { %v298_v48 = vmax.f32 %v290_v46, 0.0  ;;  %v299_v49 = vmax.f32 %v291_v47, 0.0 }
  0xce   :  { %v190_v50 = vpop.f32.mrf.mxu0  ;;  %v219_v51 = vpop.f32.mrf.mxu1 }
  0xcf   :  { %v312_v52 = vmul.f32 %v304_v20, %v298_v48  ;;  %v313_v53 = vmul.f32 %v305_v21, %v299_v49 }
  0xd0   :  { %v248_v54 = vpop.f32.mrf.mxu2  ;;  %v277_v55 = vpop.f32.mrf.mxu3 }
  0xd1   :  { %v249_v56 = vadd.f32 %v248_v54, %v190_v50  ;;  %v278_v57 = vadd.f32 %v277_v55, %v219_v51  ;;  %v322_v58 = vadd.f32 %v313_v53, %v312_v52  ;;  %v411_v50 = vsub.f32 %v679_v2, %v683_v3 }
  0xd2   :  { %v412_v2 = vsub.f32 %v687_v4, %v691_v5  ;;  %v413_v4 = vsub.f32 %v695_v6, %v699_v7 }
  0xd3   :  { %v292_v59 = vadd.f32 %v282_v11, %v249_v56  ;;  %v293_v61 = vadd.f32 %v283_v12, %v278_v57  ;;  %323 = vadd.xlane.f32.xlu1 %v322_v58 }
  0xd5   :  { %v300_v62 = vmax.f32 %v292_v59, 0.0  ;;  %v301_v63 = vmax.f32 %v293_v61, 0.0 }
  0xd7   :  { %v314_v0 = vmul.f32 %v304_v20, %v300_v62  ;;  %v315_v8 = vmul.f32 %v305_v21, %v301_v63 }
  0xd9   :  { %v325_v9 = vadd.f32 %v315_v8, %v314_v0 }
  0xdb   :  { %326 = vadd.xlane.f32.xlu1 %v325_v9 }
 0x136   :  { %v318_v13 = vpop.xlane.xlu0 %317 }
 0x137   :  { %v330_v14 = vadd.f32 %v329_v10, %v318_v13 }
 0x139   :  { %v447_v15 = vmul.f32 -1.442695, %v330_v14 }
 0x13b   :  { %460 = vpow2.f32 %v447_v15 }
 0x13e   :  { %v321_v16 = vpop.xlane.xlu0 %320 }
 0x13f   :  { %v331_v17 = vadd.f32 %v329_v10, %v321_v16 }
 0x141   :  { %v461_v18 = vpop.eup %460  ;;  %v448_v11 = vmul.f32 -1.442695, %v331_v17 }
 0x142   :  { %v346_v12 = vadd.f32 1.0, %v461_v18 }
 0x143   :  { %462 = vpow2.f32 %v448_v11 }
 0x144   :  { %464 = vrcp.f32 %v346_v12  ;;  %v361_v29 = vand.u32 2147483648, %v346_v12  ;;  %v359_v31 = vand.u32 2147483647, %v346_v12  ;;  %vm355_vm1 = vweird.f32 %v346_v12 }
 0x146   :  { %v324_v19 = vpop.xlane.xlu1 %323  ;;  %v362_v38 = vor.u32 1.1754944e-38, %v361_v29  ;;  %vm360_vm3 = vcmp.eq.f32.partialorder %v359_v31, 8.507059e+37 }
 0x147   :  { %v332_v20 = vadd.f32 %v329_v10, %v324_v19 }
 0x149   :  { %v463_v21 = vpop.eup %462  ;;  %v449_v22 = vmul.f32 -1.442695, %v332_v20 }
 0x14a   :  { %v465_v23 = vpop.eup %464  ;;  %v347_v24 = vadd.f32 1.0, %v463_v21 }
 0x14b   :  { %v351_v25 = vmul.f32 %v465_v23, %v346_v12  ;;  %466 = vpow2.f32 %v449_v22  ;;  %vm356_vm0 = vweird.f32 %v465_v23 }
 0x14c   :  { %468 = vrcp.f32 %v347_v24  ;;  %vm357_vm2 = vmor %vm355_vm1, %vm356_vm0  ;;  %v376_v45 = vand.u32 2147483648, %v347_v24  ;;  %v374_v46 = vand.u32 2147483647, %v347_v24  ;;  %vm370_vm5 = vweird.f32 %v347_v24 }
 0x14d   :  { %v352_v26 = vsub.f32 1.0, %v351_v25 }
 0x14e   :  { %v327_v27 = vpop.xlane.xlu1 %326  ;;  %v377_v52 = vor.u32 1.1754944e-38, %v376_v45  ;;  %vm375_vm7 = vcmp.eq.f32.partialorder %v374_v46, 8.507059e+37 }
 0x14f   :  { %v353_v28 = vmul.f32 %v465_v23, %v352_v26  ;;  %v333_v30 = vadd.f32 %v329_v10, %v327_v27 }
 0x151   :  { %v467_v32 = vpop.eup %466  ;;  %v354_v33 = vadd.f32 %v465_v23, %v353_v28  ;;  %v450_v34 = vmul.f32 -1.442695, %v333_v30 }
 0x152   :  { %v469_v35 = vpop.eup %468  ;;  %v348_v37 = vadd.f32 1.0, %v467_v32 }
 0x153   :  { %v366_v39 = vmul.f32 %v469_v35, %v347_v24  ;;  %470 = vpow2.f32 %v450_v34  ;;  %v358_v40 = vsel %vm357_vm2, %v465_v23, %v354_v33  ;;  %vm371_vm4 = vweird.f32 %v469_v35 }
 0x154   :  { %472 = vrcp.f32 %v348_v37  ;;  %v363_v42 = vsel %vm360_vm3, %v362_v38, %v358_v40  ;;  %vm372_vm6 = vmor %vm370_vm5, %vm371_vm4  ;;  %v391_v57 = vand.u32 2147483648, %v348_v37  ;;  %v389_v59 = vand.u32 2147483647, %v348_v37 }
 0x155   :  { %v367_v41 = vsub.f32 1.0, %v366_v39  ;;  %v414_v43 = vmul.f32 %v410_v36, %v363_v42  ;;  %vm385_vm9 = vweird.f32 %v348_v37 }
 0x156   :  { %v392_v0 = vor.u32 1.1754944e-38, %v391_v57  ;;  %vm390_vm11 = vcmp.eq.f32.partialorder %v389_v59, 8.507059e+37 }
 0x157   :  { %v368_v44 = vmul.f32 %v469_v35, %v367_v41  ;;  %v418_v47 = vadd.f32 %v414_v43, %v675_v1 }
 0x159   :  { %v471_v48 = vpop.eup %470  ;;  %v369_v49 = vadd.f32 %v469_v35, %v368_v44  ;;  %422 = vst [vmem:[#allocation11] sm:$0xff] %v418_v47 }
 0x15a   :  { %v473_v60 = vpop.eup %472  ;;  %v349_v51 = vadd.f32 1.0, %v471_v48 }
 0x15b   :  { %v381_v53 = vmul.f32 %v473_v60, %v348_v37  ;;  %v373_v54 = vsel %vm372_vm6, %v469_v35, %v369_v49  ;;  %vm386_vm8 = vweird.f32 %v473_v60 }
 0x15c   :  { %474 = vrcp.f32 %v349_v51  ;;  %v378_v56 = vsel %vm375_vm7, %v377_v52, %v373_v54  ;;  %vm387_vm10 = vmor %vm385_vm9, %vm386_vm8  ;;  %v406_v15 = vand.u32 2147483648, %v349_v51  ;;  %v404_v17 = vand.u32 2147483647, %v349_v51 }
 0x15d   :  { %v382_v55 = vsub.f32 1.0, %v381_v53  ;;  %v415_v58 = vmul.f32 %v411_v50, %v378_v56  ;;  %vm400_vm13 = vweird.f32 %v349_v51 }
 0x15e   :  { %v407_v11 = vor.u32 1.1754944e-38, %v406_v15  ;;  %vm405_vm15 = vcmp.eq.f32.partialorder %v404_v17, 8.507059e+37 }
 0x15f   :  { %v383_v1 = vmul.f32 %v473_v60, %v382_v55  ;;  %v419_v61 = vadd.f32 %v415_v58, %v683_v3 }
 0x161   :  { %v384_v62 = vadd.f32 %v473_v60, %v383_v1  ;;  %423 = vst [vmem:[#allocation11 + $0x8] sm:$0xff] %v419_v61 }
 0x162   :  { %v475_v63 = vpop.eup %474 }
 0x163   :  { %v396_v8 = vmul.f32 %v475_v63, %v349_v51  ;;  %v388_v9 = vsel %vm387_vm10, %v473_v60, %v384_v62  ;;  %vm401_vm12 = vweird.f32 %v475_v63 }
 0x164   :  { %v393_v10 = vsel %vm390_vm11, %v392_v0, %v388_v9  ;;  %vm402_vm14 = vmor %vm400_vm13, %vm401_vm12 }
 0x165   :  { %v397_v13 = vsub.f32 1.0, %v396_v8  ;;  %v416_v14 = vmul.f32 %v412_v2, %v393_v10 }
 0x167   :  { %v398_v16 = vmul.f32 %v475_v63, %v397_v13  ;;  %v420_v3 = vadd.f32 %v416_v14, %v691_v5 }
 0x169   :  { %v399_v18 = vadd.f32 %v475_v63, %v398_v16  ;;  %424 = vst [vmem:[#allocation11 + $0x10] sm:$0xff] %v420_v3 }
 0x16b   :  { %v403_v12 = vsel %vm402_vm14, %v475_v63, %v399_v18 }
 0x16c   :  { %v408_v19 = vsel %vm405_vm15, %v407_v11, %v403_v12 }
 0x16d   :  { %v417_v20 = vmul.f32 %v413_v4, %v408_v19 }
 0x16f   :  { %v421_v5 = vadd.f32 %v417_v20, %v699_v7 }
 0x171   :  { %425 = vst [vmem:[#allocation11 + $0x18] sm:$0xff] %v421_v5 }
 0x172   :  { %438 = dma.vmem_to_hbm [thread:$0]  %s431_s26, 512, %s433_s29, [#allocation5], %s605_s9, %s605_s9, %s606_s10  }
 0x173   :  { %602 = dma.done.wait [#allocation5], 512  }
 0x174   :  { %603 = vsyncadd [#allocation5], 4294966784 }
 0x175   :  { %443 = vsyncpa [#allocation4], 1 }
 0x176   :  { %444 = vsyncpa [#allocation7], 1 }
 0x177   :  { %445 = vsyncpa [#allocation10], 1 }
 0x178   :  { %446 = vsyncpa [#allocation5], 1 }

</bundles_post_ra>
